<compile_context>
chip_gen: v7x
topology: tpu7x:2x2x1
jax: 0.10.0
libtpu: 0.0.40
codegen_flags: <defaults>
</compile_context>

<pallas_src>
import jax
import jax.numpy as jnp
from jax.experimental import pallas as pl
from jax.experimental.pallas import tpu as pltpu


_LANE = 128      # last-dim (lane) granularity
_SUBLANE = 8     # second-to-last (sublane) granularity


def _round_up(n, m):
    return ((n + m - 1) // m) * m


# ---------------- fused Pallas kernel ----------------

def _make_mlp_kernel(num_hidden):
    """Builds a kernel over refs: (x, [w0, b0, w1, b1, ...], w_final, out)."""

    def kernel(*refs):
        x_ref = refs[0]
        o_ref = refs[-1]
        h = x_ref[...]                                          # bf16 (tile_b, Din_pad)
        idx = 1
        for _ in range(num_hidden):
            w_ref = refs[idx]
            b_ref = refs[idx + 1]
            idx += 2
            acc = jnp.dot(h, w_ref[...], preferred_element_type=jnp.float32)
            acc = acc + b_ref[...]                              # f32 epilogue (bias)
            h = jnp.maximum(acc, 0.0).astype(jnp.bfloat16)      # ReLU, re-cast for next MXU
        w_ref = refs[idx]                                       # final layer, no bias
        o_ref[...] = jnp.dot(
            h, w_ref[...], preferred_element_type=jnp.float32
        ).astype(o_ref.dtype)

    return kernel


# ---------------- parameter construction / packing (plain-JAX glue) ----------------

def init_mlp_params(key, input_dim, hidden_dim, output_dim, num_layers):
    """f32 'logical' params matching the PyTorch layer shapes.

    PyTorch nn.Linear weight is (out, in); stored transposed as (in, out) so the kernel
    computes x @ W (+ b) directly.
      - hidden layers: {'w': (in, hidden), 'b': (1, hidden)}   (Linear + ReLU)
      - final layer:   {'w': (hidden_or_in, out)}              (Linear, bias=False)
    """
    assert num_layers >= 0, "negative layers?!?"
    params = []
    if num_layers == 0:
        return params  # identity
    if num_layers == 1:
        bound = 1.0 / jnp.sqrt(input_dim)
        w = jax.random.uniform(key, (input_dim, output_dim), jnp.float32, -bound, bound)
        params.append({"w": w})
        return params

    prev_dim = input_dim
    keys = jax.random.split(key, num_layers)
    for i in range(num_layers - 1):
        kw, kb = jax.random.split(keys[i])
        bound = 1.0 / jnp.sqrt(prev_dim)
        w = jax.random.uniform(kw, (prev_dim, hidden_dim), jnp.float32, -bound, bound)
        b = jax.random.uniform(kb, (1, hidden_dim), jnp.float32, -bound, bound)
        params.append({"w": w, "b": b})
        prev_dim = hidden_dim
    bound = 1.0 / jnp.sqrt(prev_dim)
    w_final = jax.random.uniform(keys[-1], (prev_dim, output_dim), jnp.float32, -bound, bound)
    params.append({"w": w_final})
    return params


def pack_mlp_params(layers, input_dim, output_dim):
    """Zero-pad feature dims to multiples of 128; weights -> bf16, biases stay f32."""
    packed = []
    for layer in layers:
        w = layer["w"]
        din, dout = w.shape
        w_p = jnp.zeros((_round_up(din, _LANE), _round_up(dout, _LANE)), jnp.bfloat16)
        w_p = w_p.at[:din, :dout].set(w.astype(jnp.bfloat16))
        entry = {"w": w_p}
        if "b" in layer:
            b_p = jnp.zeros((1, _round_up(dout, _LANE)), jnp.float32)
            b_p = b_p.at[:, :dout].set(layer["b"])
            entry["b"] = b_p
        packed.append(entry)
    return {"layers": packed, "input_dim": input_dim, "output_dim": output_dim}


# ---------------- forward ----------------

def mlp_forward(packed, x, *, max_batch_tile=256):
    """Forward pass. x: (batch, input_dim) float32. Returns (batch, output_dim) float32."""
    layers = packed["layers"]
    if not layers:
        return x  # nn.Identity

    input_dim = packed["input_dim"]
    output_dim = packed["output_dim"]
    B = x.shape[0]
    din_pad = layers[0]["w"].shape[0]
    dout_pad = layers[-1]["w"].shape[1]

    tile_b = min(max_batch_tile, _round_up(B, _SUBLANE))
    b_pad = _round_up(B, tile_b)
    grid_b = b_pad // tile_b

    # lane-dense, zero-padded bf16 activations
    x_p = jnp.zeros((b_pad, din_pad), jnp.bfloat16)
    x_p = x_p.at[:B, :input_dim].set(x.astype(jnp.bfloat16))

    num_hidden = len(layers) - 1
    kernel = _make_mlp_kernel(num_hidden)

    const_map = lambda i: (0, 0)  # weights/biases: same block for every batch tile
    in_specs = [pl.BlockSpec((tile_b, din_pad), lambda i: (i, 0))]
    args = [x_p]
    flops = 0
    bytes_accessed = x_p.size * x_p.dtype.itemsize
    for layer in layers[:-1]:
        w, b = layer["w"], layer["b"]
        in_specs.append(pl.BlockSpec(w.shape, const_map))
        in_specs.append(pl.BlockSpec(b.shape, const_map))
        args += [w, b]
        flops += 2 * b_pad * w.shape[0] * w.shape[1]
        bytes_accessed += w.size * w.dtype.itemsize + b.size * b.dtype.itemsize
    w_final = layers[-1]["w"]
    in_specs.append(pl.BlockSpec(w_final.shape, const_map))
    args.append(w_final)
    flops += 2 * b_pad * w_final.shape[0] * w_final.shape[1]
    bytes_accessed += w_final.size * w_final.dtype.itemsize
    bytes_accessed += b_pad * dout_pad * 4  # f32 output

    out = pl.pallas_call(
        kernel,
        out_shape=jax.ShapeDtypeStruct((b_pad, dout_pad), jnp.float32),
        grid_spec=pltpu.PrefetchScalarGridSpec(
            num_scalar_prefetch=0,
            grid=(grid_b,),
            in_specs=in_specs,
            out_specs=pl.BlockSpec((tile_b, dout_pad), lambda i: (i, 0)),
        ),
        compiler_params=pltpu.CompilerParams(
            dimension_semantics=("parallel",),   # batch axis -> megacore sharding on v7x
        ),
        cost_estimate=pl.CostEstimate(
            flops=flops, transcendentals=0, bytes_accessed=bytes_accessed),
    )(*args)

    return out[:B, :output_dim]


# ---------------- demo / self-check ----------------

if __name__ == "__main__":
    key = jax.random.PRNGKey(0)
    k_param, k_x = jax.random.split(key)

    batch = 8
    input_dim = 32
    hidden_dim = 64
    output_dim = 16
    num_layers = 3

    layers = init_mlp_params(k_param, input_dim, hidden_dim, output_dim, num_layers)
    packed = pack_mlp_params(layers, input_dim, output_dim)
    x = jax.random.normal(k_x, (batch, input_dim), jnp.float32)

    out = mlp_forward(packed, x)
    out = jax.block_until_ready(out)
    assert out.shape == (batch, output_dim)

    # reference 1: bf16-matched (same matmul precision as the kernel)
    h = x
    for layer in layers[:-1]:
        acc = jnp.dot(h.astype(jnp.bfloat16), layer["w"].astype(jnp.bfloat16),
                      preferred_element_type=jnp.float32)
        h = jnp.maximum(acc + layer["b"], 0.0)
    ref_bf16 = jnp.dot(h.astype(jnp.bfloat16), layers[-1]["w"].astype(jnp.bfloat16),
                       preferred_element_type=jnp.float32)

    # reference 2: pure f32
    h = x
    for layer in layers[:-1]:
        h = jnp.maximum(h @ layer["w"] + layer["b"], 0.0)
    ref_f32 = h @ layers[-1]["w"]

    assert jnp.allclose(out, ref_bf16, atol=1e-2, rtol=1e-2)
    assert jnp.allclose(out, ref_f32, atol=5e-2, rtol=5e-2)

    print("KERNEL_OK")
</pallas_src>

<mosaic_0001>
module attributes {stable_mosaic.version = 11 : i64} {
  func.func @kernel(%arg0: i32, %arg1: memref<8x128xbf16, #tpu.memory_space<vmem>>, %arg2: memref<128x128xbf16, #tpu.memory_space<vmem>>, %arg3: memref<1x128xf32, #tpu.memory_space<vmem>>, %arg4: memref<128x128xbf16, #tpu.memory_space<vmem>>, %arg5: memref<1x128xf32, #tpu.memory_space<vmem>>, %arg6: memref<128x128xbf16, #tpu.memory_space<vmem>>, %arg7: memref<8x128xf32, #tpu.memory_space<vmem>>) attributes {dimension_semantics = [#tpu.dimension_semantics<parallel>], iteration_bounds = array<i64: 1>, scalar_prefetch = 0 : i64, scratch_operands = 0 : i64, tpu.core_type = #tpu.core_type<tc>, window_params = [{transform_indices = @transform_0, window_bounds = array<i64: 8, 128>}, {pipeline_mode = #tpu.pipeline_mode<synchronous>, transform_indices = @transform_1, window_bounds = array<i64: 128, 128>}, {pipeline_mode = #tpu.pipeline_mode<synchronous>, transform_indices = @transform_2, window_bounds = array<i64: 1, 128>}, {pipeline_mode = #tpu.pipeline_mode<synchronous>, transform_indices = @transform_3, window_bounds = array<i64: 128, 128>}, {pipeline_mode = #tpu.pipeline_mode<synchronous>, transform_indices = @transform_4, window_bounds = array<i64: 1, 128>}, {pipeline_mode = #tpu.pipeline_mode<synchronous>, transform_indices = @transform_5, window_bounds = array<i64: 128, 128>}, {transform_indices = @transform_6, window_bounds = array<i64: 8, 128>}]} {
    %c0 = arith.constant 0 : index
    %c0_0 = arith.constant 0 : index
    %0 = vector.load %arg1[%c0, %c0_0] : memref<8x128xbf16, #tpu.memory_space<vmem>>, vector<8x128xbf16>
    %c0_1 = arith.constant 0 : index
    %c0_2 = arith.constant 0 : index
    %1 = vector.load %arg2[%c0_1, %c0_2] : memref<128x128xbf16, #tpu.memory_space<vmem>>, vector<128x128xbf16>
    %cst = arith.constant dense<0.000000e+00> : vector<8x128xf32>
    %2 = tpu.matmul %0, %1, %cst {dimension_numbers = #tpu.dot_dimension_numbers<[1], [0], [0], [1], [0, 0, 1, 1], [], []>} : vector<8x128xbf16>, vector<128x128xbf16>, vector<8x128xf32> -> vector<8x128xf32>
    %c0_3 = arith.constant 0 : index
    %c0_4 = arith.constant 0 : index
    %3 = vector.load %arg3[%c0_3, %c0_4] : memref<1x128xf32, #tpu.memory_space<vmem>>, vector<1x128xf32>
    %4 = vector.broadcast %3 : vector<1x128xf32> to vector<8x128xf32>
    %5 = arith.addf %2, %4 : vector<8x128xf32>
    %cst_5 = arith.constant 0.000000e+00 : f32
    %6 = vector.broadcast %cst_5 : f32 to vector<8x128xf32>
    %7 = arith.maximumf %5, %6 : vector<8x128xf32>
    %8 = arith.truncf %7 : vector<8x128xf32> to vector<8x128xbf16>
    %c0_6 = arith.constant 0 : index
    %c0_7 = arith.constant 0 : index
    %9 = vector.load %arg4[%c0_6, %c0_7] : memref<128x128xbf16, #tpu.memory_space<vmem>>, vector<128x128xbf16>
    %cst_8 = arith.constant dense<0.000000e+00> : vector<8x128xf32>
    %10 = tpu.matmul %8, %9, %cst_8 {dimension_numbers = #tpu.dot_dimension_numbers<[1], [0], [0], [1], [0, 0, 1, 1], [], []>} : vector<8x128xbf16>, vector<128x128xbf16>, vector<8x128xf32> -> vector<8x128xf32>
    %c0_9 = arith.constant 0 : index
    %c0_10 = arith.constant 0 : index
    %11 = vector.load %arg5[%c0_9, %c0_10] : memref<1x128xf32, #tpu.memory_space<vmem>>, vector<1x128xf32>
    %12 = vector.broadcast %11 : vector<1x128xf32> to vector<8x128xf32>
    %13 = arith.addf %10, %12 : vector<8x128xf32>
    %cst_11 = arith.constant 0.000000e+00 : f32
    %14 = vector.broadcast %cst_11 : f32 to vector<8x128xf32>
    %15 = arith.maximumf %13, %14 : vector<8x128xf32>
    %16 = arith.truncf %15 : vector<8x128xf32> to vector<8x128xbf16>
    %c0_12 = arith.constant 0 : index
    %c0_13 = arith.constant 0 : index
    %17 = vector.load %arg6[%c0_12, %c0_13] : memref<128x128xbf16, #tpu.memory_space<vmem>>, vector<128x128xbf16>
    %cst_14 = arith.constant dense<0.000000e+00> : vector<8x128xf32>
    %18 = tpu.matmul %16, %17, %cst_14 {dimension_numbers = #tpu.dot_dimension_numbers<[1], [0], [0], [1], [0, 0, 1, 1], [], []>} : vector<8x128xbf16>, vector<128x128xbf16>, vector<8x128xf32> -> vector<8x128xf32>
    %c0_15 = arith.constant 0 : index
    %c0_16 = arith.constant 0 : index
    %19 = vector.load %arg7[%c0_15, %c0_16] : memref<8x128xf32, #tpu.memory_space<vmem>>, vector<8x128xf32>
    tpu.vector_store %arg7[%c0_15, %c0_16], %18 {strides = array<i32>} : memref<8x128xf32, #tpu.memory_space<vmem>>, vector<8x128xf32>,
    return
  }
  func.func @transform_0(%arg0: i32) -> (i32, i32) {
    %c0_i32 = arith.constant 0 : i32
    %c0_i32_0 = arith.constant 0 : i32
    return %arg0, %c0_i32 : i32, i32
  }
  func.func @transform_1(%arg0: i32) -> (i32, i32) {
    %c0_i32 = arith.constant 0 : i32
    %c0_i32_0 = arith.constant 0 : i32
    %c0_i32_1 = arith.constant 0 : i32
    return %c0_i32, %c0_i32_0 : i32, i32
  }
  func.func @transform_2(%arg0: i32) -> (i32, i32) {
    %c0_i32 = arith.constant 0 : i32
    %c0_i32_0 = arith.constant 0 : i32
    %c0_i32_1 = arith.constant 0 : i32
    return %c0_i32, %c0_i32_0 : i32, i32
  }
  func.func @transform_3(%arg0: i32) -> (i32, i32) {
    %c0_i32 = arith.constant 0 : i32
    %c0_i32_0 = arith.constant 0 : i32
    %c0_i32_1 = arith.constant 0 : i32
    return %c0_i32, %c0_i32_0 : i32, i32
  }
  func.func @transform_4(%arg0: i32) -> (i32, i32) {
    %c0_i32 = arith.constant 0 : i32
    %c0_i32_0 = arith.constant 0 : i32
    %c0_i32_1 = arith.constant 0 : i32
    return %c0_i32, %c0_i32_0 : i32, i32
  }
  func.func @transform_5(%arg0: i32) -> (i32, i32) {
    %c0_i32 = arith.constant 0 : i32
    %c0_i32_0 = arith.constant 0 : i32
    %c0_i32_1 = arith.constant 0 : i32
    return %c0_i32, %c0_i32_0 : i32, i32
  }
  func.func @transform_6(%arg0: i32) -> (i32, i32) {
    %c0_i32 = arith.constant 0 : i32
    %c0_i32_0 = arith.constant 0 : i32
    return %arg0, %c0_i32 : i32, i32
  }
}

</mosaic_0001>

<bundles_post_ra>
// kernel: tpu_custom_call.1
= control target key start
LH: loop header
LB: loop body
LE: loop exit
PB: predicated region body
PF: predicated region fallthrough
CT: control target
= control target key end

     0   :  { %11 = vsyncpa [#allocation3], 0  ;;  %s840_s0 = inlined_call_operand.hbm [shape: bf16[8,128], index: 0, kind: input, shape index: {}]   ;;  %s841_s1 = inlined_call_operand.hbm [shape: bf16[128,128], index: 1, kind: input, shape index: {}]   ;;  %s842_s2 = inlined_call_operand.vmem [shape: f32[1,128], index: 2, kind: input, shape index: {}]   ;;  %s843_s3 = inlined_call_operand.hbm [shape: bf16[128,128], index: 3, kind: input, shape index: {}]   ;;  %s844_s4 = inlined_call_operand.vmem [shape: f32[1,128], index: 4, kind: input, shape index: {}]   ;;  %s845_s5 = inlined_call_operand.hbm [shape: bf16[128,128], index: 5, kind: input, shape index: {}]   ;;  %s846_s6 = inlined_call_operand.hbm [shape: f32[8,128], index: 6, kind: output, shape index: {}]  }
   0x1   :  { %12 = vsyncpa [#allocation6], 0 }
   0x2   :  { %13 = vsyncpa [#allocation9], 0 }
   0x3   :  { %14 = vsyncpa [#allocation4], 0  ;;  %s691_s21 = smov [#allocation5]   ;;  %s573_s25 = scalar_lea.hbm %s841_s1, 1024 }
   0x4   :  { %s30_s22 = sshll.u32 %s691_s21, 4  ;;  %p574_p0 = scmp.ne.s32.totalorder %s841_s1, %s573_s25  ;;  %s31_s22 = int_to_ptr.vmem [resolvable:$true] %s30_s22 }
   0x5   :  { %p577_p1 = scmp.lt.u32.totalorder %s573_s25, %s841_s1 }
   0x7   :  { %p579_p2 = pnand %p577_p1, %p574_p0 }
   0x9   :  { %582 = shalt.err (!%p579_p2)
}
   0xa   :  { %s583_s30 = scalar_lea.vmem %s31_s22, 1024  ;;  %p588_p4 = scmp.lt.s32.totalorder %s31_s22, %s31_s22 }
   0xb   :  { %p584_p3 = scmp.ne.s32.totalorder %s31_s22, %s583_s30  ;;  %p589_p5 = scmp.lt.s32.totalorder %s583_s30, %s583_s30 }
   0xd   :  { %p590_p6 = por %p589_p5, %p588_p4 }
   0xf   :  { %p591_p7 = pnand %p590_p6, %p584_p3 }
  0x11   :  { %594 = shalt.err (!%p591_p7)
}
  0x12   :  { %s692_s7 = smov 64   ;;  %s693_s8 = smov 4  }
  0x13   :  { %36 = dma.hbm_to_vmem [thread:$0]  %s841_s1, 1024, %s31_s22, [#allocation6], %s692_s7, %s692_s7, %s693_s8  }
  0x14   :  { %s694_s11 = smov [#allocation2]   ;;  %s695_s13 = smov [#allocation7]  }
  0x15   :  { %s21_s12 = sshll.u32 %s694_s11, 4  ;;  %s44_s14 = sshll.u32 %s695_s13, 4  ;;  %s22_s12 = int_to_ptr.vmem [resolvable:$true] %s21_s12  ;;  %s45_s14 = int_to_ptr.vmem [resolvable:$true] %s44_s14 }
  0x16   :  { %s595_s17 = scalar_lea.hbm %s840_s0, 64 }
  0x17   :  { %p596_p8 = scmp.ne.s32.totalorder %s840_s0, %s595_s17  ;;  %p599_p9 = scmp.lt.u32.totalorder %s595_s17, %s840_s0 }
  0x19   :  { %p601_p10 = pnand %p599_p9, %p596_p8 }
  0x1b   :  { %604 = shalt.err (!%p601_p10)
}
  0x1c   :  { %s605_s1 = scalar_lea.vmem %s22_s12, 64  ;;  %p610_p12 = scmp.lt.s32.totalorder %s22_s12, %s22_s12 }
  0x1d   :  { %p606_p11 = scmp.ne.s32.totalorder %s22_s12, %s605_s1  ;;  %p611_p13 = scmp.lt.s32.totalorder %s605_s1, %s605_s1 }
  0x1f   :  { %p612_p0 = por %p611_p13, %p610_p12 }
  0x21   :  { %p613_p1 = pnand %p612_p0, %p606_p11 }
  0x23   :  { %616 = shalt.err (!%p613_p1)
}
  0x24   :  { %24 = dma.hbm_to_vmem [thread:$0]  %s840_s0, 64, %s22_s12, [#allocation3]  }
  0x25   :  { %s617_s26 = scalar_lea.hbm %s843_s3, 1024 }
  0x26   :  { %p618_p2 = scmp.ne.s32.totalorder %s843_s3, %s617_s26  ;;  %p621_p3 = scmp.lt.u32.totalorder %s617_s26, %s843_s3 }
  0x28   :  { %p623_p4 = pnand %p621_p3, %p618_p2 }
  0x2a   :  { %626 = shalt.err (!%p623_p4)
}
  0x2b   :  { %s627_s9 = scalar_lea.vmem %s45_s14, 1024  ;;  %p632_p6 = scmp.lt.s32.totalorder %s45_s14, %s45_s14 }
  0x2c   :  { %p628_p5 = scmp.ne.s32.totalorder %s45_s14, %s627_s9  ;;  %p633_p7 = scmp.lt.s32.totalorder %s627_s9, %s627_s9 }
  0x2e   :  { %p634_p8 = por %p633_p7, %p632_p6 }
  0x30   :  { %p635_p9 = pnand %p634_p8, %p628_p5 }
  0x32   :  { %638 = shalt.err (!%p635_p9)
}
  0x33   :  { %50 = dma.hbm_to_vmem [thread:$0]  %s843_s3, 1024, %s45_s14, [#allocation6], %s692_s7, %s692_s7, %s693_s8  }
  0x34   :  { %s696_s11 = smov [#allocation8]   ;;  %s639_s16 = scalar_lea.hbm %s845_s5, 1024 }
  0x35   :  { %s58_s12 = sshll.u32 %s696_s11, 4  ;;  %p640_p10 = scmp.ne.s32.totalorder %s845_s5, %s639_s16  ;;  %s59_s12 = int_to_ptr.vmem [resolvable:$true] %s58_s12 }
  0x36   :  { %p643_p11 = scmp.lt.u32.totalorder %s639_s16, %s845_s5 }
  0x38   :  { %p645_p12 = pnand %p643_p11, %p640_p10 }
  0x3a   :  { %648 = shalt.err (!%p645_p12)
}
  0x3b   :  { %s649_s21 = scalar_lea.vmem %s59_s12, 1024  ;;  %p654_p0 = scmp.lt.s32.totalorder %s59_s12, %s59_s12 }
  0x3c   :  { %p650_p13 = scmp.ne.s32.totalorder %s59_s12, %s649_s21  ;;  %p655_p1 = scmp.lt.s32.totalorder %s649_s21, %s649_s21 }
  0x3e   :  { %p656_p2 = por %p655_p1, %p654_p0 }
  0x40   :  { %p657_p3 = pnand %p656_p2, %p650_p13 }
  0x42   :  { %660 = shalt.err (!%p657_p3)
}
  0x43   :  { %64 = dma.hbm_to_vmem [thread:$0]  %s845_s5, 1024, %s59_s12, [#allocation9], %s692_s7, %s692_s7, %s693_s8  }
  0x44   :  { %683 = dma.done.wait [#allocation3], 64  }
  0x45   :  { %684 = vsyncadd [#allocation3], 4294967232 }
  0x46   :  { %685 = dma.done.wait [#allocation6], 2048  }
  0x47   :  { %686 = vsyncadd [#allocation6], 4294965248 }
  0x48   :  { %687 = dma.done.wait [#allocation9], 1024  }
  0x49   :  { %688 = vsyncadd [#allocation9], 4294966272  ;;  %v697_v0 = vmov 0.0   ;;  %vm698_vm0 = vmmov 0   ;;  %v549_v1 = vld [vmem:[#allocation5] sm:$0xff]   ;;  %v550_v2 = vld [vmem:[#allocation5 + $0x8] sm:$0xff]  }
  0x4a   :  { %480 = vmatprep.subr.bf16.mxu0 %v697_v0  ;;  %496 = vmatprep.mubr.msk.bf16.mxu0 %vm698_vm0, %v697_v0  ;;  %v551_v3 = vld [vmem:[#allocation5 + $0x10] sm:$0xff]   ;;  %v557_v4 = vld [vmem:[#allocation7] sm:$0xff]   ;;  %v552_v5 = vld [vmem:[#allocation5 + $0x18] sm:$0xff]  }
  0x4b   :  { %500 = vmatprep.subr.bf16.mxu1 %v697_v0  ;;  %516 = vmatprep.mubr.msk.bf16.mxu1 %vm698_vm0, %v697_v0  ;;  %v558_v6 = vld [vmem:[#allocation7 + $0x8] sm:$0xff]   ;;  %v553_v7 = vld [vmem:[#allocation5 + $0x20] sm:$0xff]   ;;  %v559_v8 = vld [vmem:[#allocation7 + $0x10] sm:$0xff]  }
  0x4c   :  { %481 = vmatpush3.bf16.msra.mxu0 %v549_v1  ;;  %501 = vmatpush3.bf16.msra.mxu1 %v557_v4  ;;  %v554_v9 = vld [vmem:[#allocation5 + $0x28] sm:$0xff]   ;;  %v560_v10 = vld [vmem:[#allocation7 + $0x18] sm:$0xff]   ;;  %v555_v11 = vld [vmem:[#allocation5 + $0x30] sm:$0xff]  }
  0x4d   :  { %482 = vmatprep.subr.bf16.mxu0 %v697_v0  ;;  %502 = vmatprep.subr.bf16.mxu1 %v697_v0  ;;  %v561_v12 = vld [vmem:[#allocation7 + $0x20] sm:$0xff]   ;;  %v556_v13 = vld [vmem:[#allocation5 + $0x38] sm:$0xff]   ;;  %v562_v14 = vld [vmem:[#allocation7 + $0x28] sm:$0xff]  }
  0x4e   :  { %v78_v15 = vld [vmem:[#allocation2] sm:$0xf]  ;;  %v563_v16 = vld [vmem:[#allocation7 + $0x30] sm:$0xff]   ;;  %v565_v18 = vld [vmem:[#allocation8] sm:$0xff]  }
  0x4f   :  { %v564_v17 = vld [vmem:[#allocation7 + $0x38] sm:$0xff]   ;;  %v566_v19 = vld [vmem:[#allocation8 + $0x8] sm:$0xff]   ;;  %v567_v20 = vld [vmem:[#allocation8 + $0x10] sm:$0xff]  }
  0x50   :  { %483 = vmatpush3.bf16.msra.mxu0 %v550_v2  ;;  %503 = vmatpush3.bf16.msra.mxu1 %v558_v6  ;;  %v568_v21 = vld [vmem:[#allocation8 + $0x18] sm:$0xff]   ;;  %v569_v22 = vld [vmem:[#allocation8 + $0x20] sm:$0xff]   ;;  %v570_v23 = vld [vmem:[#allocation8 + $0x28] sm:$0xff]  }
  0x51   :  { %484 = vmatprep.subr.bf16.mxu0 %v697_v0  ;;  %504 = vmatprep.subr.bf16.mxu1 %v697_v0  ;;  %v427_v24 = vld [vmem:[%s842_s2] ss:$0 sm:$0xff]  ;;  %v571_v32 = vld [vmem:[#allocation8 + $0x30] sm:$0xff]   ;;  %s699_s2 = smov [#allocation10]  }
  0x52   :  { %v572_v33 = vld [vmem:[#allocation8 + $0x38] sm:$0xff]   ;;  %s416_s22 = sshll.u32 %s699_s2, 4  ;;  %s417_s22 = int_to_ptr.vmem [resolvable:$true] %s416_s22 }
  0x53   :  { %v436_v34 = vld [vmem:[%s844_s4] ss:$0 sm:$0xff]  ;;  %s661_s23 = scalar_lea.vmem %s417_s22, 128  ;;  %p666_p5 = scmp.lt.s32.totalorder %s417_s22, %s417_s22 }
  0x54   :  { %485 = vmatpush3.bf16.msra.mxu0 %v551_v3  ;;  %505 = vmatpush3.bf16.msra.mxu1 %v559_v8  ;;  %p662_p4 = scmp.ne.s32.totalorder %s417_s22, %s661_s23  ;;  %p667_p6 = scmp.lt.s32.totalorder %s661_s23, %s661_s23 }
  0x55   :  { %486 = vmatprep.subr.bf16.mxu0 %v697_v0  ;;  %506 = vmatprep.subr.bf16.mxu1 %v697_v0 }
  0x56   :  { %p668_p7 = por %p667_p6, %p666_p5 }
  0x58   :  { %487 = vmatpush3.bf16.msra.mxu0 %v552_v5  ;;  %507 = vmatpush3.bf16.msra.mxu1 %v560_v10  ;;  %p669_p8 = pnand %p668_p7, %p662_p4 }
  0x59   :  { %488 = vmatprep.subr.bf16.mxu0 %v697_v0  ;;  %508 = vmatprep.subr.bf16.mxu1 %v697_v0 }
  0x5c   :  { %489 = vmatpush3.bf16.msra.mxu0 %v553_v7  ;;  %509 = vmatpush3.bf16.msra.mxu1 %v561_v12 }
  0x5d   :  { %490 = vmatprep.subr.bf16.mxu0 %v697_v0  ;;  %510 = vmatprep.subr.bf16.mxu1 %v697_v0 }
  0x60   :  { %491 = vmatpush3.bf16.msra.mxu0 %v554_v9  ;;  %511 = vmatpush3.bf16.msra.mxu1 %v562_v14 }
  0x61   :  { %492 = vmatprep.subr.bf16.mxu0 %v697_v0  ;;  %512 = vmatprep.subr.bf16.mxu1 %v697_v0 }
  0x64   :  { %493 = vmatpush3.bf16.msra.mxu0 %v555_v11  ;;  %513 = vmatpush3.bf16.msra.mxu1 %v563_v16 }
  0x65   :  { %494 = vmatprep.subr.bf16.mxu0 %v697_v0  ;;  %514 = vmatprep.subr.bf16.mxu1 %v697_v0 }
  0x68   :  { %495 = vmatpush3.bf16.msra.mxu0 %v556_v13  ;;  %515 = vmatpush3.bf16.msra.mxu1 %v564_v17 }
  0x69   :  { %520 = vmatprep.subr.bf16.mxu0 %v697_v0 }
  0x6b   :  { %497 = vmatmul.mubr.bf16.vlgmr.msra.gmra.mrb[0].mxu0 %v78_v15 }
  0x6c   :  { %536 = vmatprep.mubr.msk.bf16.mxu0 %vm698_vm0, %v697_v0  ;;  %521 = vmatpush3.bf16.msra.mxu0 %v565_v18 }
  0x6d   :  { %522 = vmatprep.subr.bf16.mxu0 %v697_v0 }
  0x70   :  { %523 = vmatpush3.bf16.msra.mxu0 %v566_v19 }
  0x71   :  { %524 = vmatprep.subr.bf16.mxu0 %v697_v0 }
  0x74   :  { %525 = vmatpush3.bf16.msra.mxu0 %v567_v20 }
  0x75   :  { %526 = vmatprep.subr.bf16.mxu0 %v697_v0 }
  0x78   :  { %527 = vmatpush3.bf16.msra.mxu0 %v568_v21 }
  0x79   :  { %528 = vmatprep.subr.bf16.mxu0 %v697_v0 }
  0x7c   :  { %529 = vmatpush3.bf16.msra.mxu0 %v569_v22 }
  0x7d   :  { %530 = vmatprep.subr.bf16.mxu0 %v697_v0 }
  0x80   :  { %531 = vmatpush3.bf16.msra.mxu0 %v570_v23 }
  0x81   :  { %532 = vmatprep.subr.bf16.mxu0 %v697_v0 }
  0x84   :  { %533 = vmatpush3.bf16.msra.mxu0 %v571_v32 }
  0x85   :  { %534 = vmatprep.subr.bf16.mxu0 %v697_v0 }
  0x88   :  { %535 = vmatpush3.bf16.msra.mxu0 %v572_v33 }
 0x13e   :  { %v184_v25 = vpop.f32.mrb[0].mxu0 }
 0x13f   :  { %v185_v26 = vadd.f32 %v427_v24, %v184_v25  ;;  %v498_v27 = vpop.f32.mrb[1].mxu0 }
 0x140   :  { %v187_v28 = vpop.f32.mrb[2].mxu0 }
 0x141   :  { %v190_v29 = vmax.f32 %v185_v26, 0.0  ;;  %v499_v30 = vpop.f32.mrb[3].mxu0 }
 0x143   :  { %v191_v31 = vpack.c.bf16 %v190_v29, %v190_v29 }
 0x145   :  { %517 = vmatmul.mubr.bf16.vlgmr.msra.gmra.mrb[0].mxu1 %v191_v31 }
 0x218   :  { %v297_v35 = vpop.f32.mrb[0].mxu1 }
 0x219   :  { %v298_v36 = vadd.f32 %v436_v34, %v297_v35  ;;  %v518_v37 = vpop.f32.mrb[1].mxu1 }
 0x21a   :  { %v300_v38 = vpop.f32.mrb[2].mxu1 }
 0x21b   :  { %v303_v39 = vmax.f32 %v298_v36, 0.0  ;;  %v519_v40 = vpop.f32.mrb[3].mxu1 }
 0x21d   :  { %v304_v41 = vpack.c.bf16 %v303_v39, %v303_v39 }
 0x21f   :  { %537 = vmatmul.mubr.bf16.vlgmr.msra.gmra.mrb[4].mxu0 %v304_v41 }
 0x2f2   :  { %v403_v42 = vpop.f32.mrb[4].mxu0 }
 0x2f3   :  { %409 = vst [vmem:[#allocation10] sm:$0xff] %v403_v42  ;;  %v538_v43 = vpop.f32.mrb[5].mxu0 }
 0x2f4   :  { %v406_v44 = vpop.f32.mrb[6].mxu0 }
 0x2f5   :  { %672 = shalt.err (!%p669_p8)
}
 0x2f6   :  { %s673_s25 = scalar_lea.hbm %s846_s6, 128 }
 0x2f7   :  { %p674_p9 = scmp.ne.s32.totalorder %s846_s6, %s673_s25  ;;  %p677_p10 = scmp.lt.u32.totalorder %s673_s25, %s846_s6 }
 0x2f9   :  { %p679_p11 = pnand %p677_p10, %p674_p9 }
 0x2fb   :  { %682 = shalt.err (!%p679_p11)
}
 0x2fc   :  { %419 = dma.vmem_to_hbm [thread:$0]  %s417_s22, 128, %s846_s6, [#allocation4]   ;;  %v539_v45 = vpop.f32.mrb[7].mxu0 }
 0x2fd   :  { %689 = dma.done.wait [#allocation4], 128  }
 0x2fe   :  { %690 = vsyncadd [#allocation4], 4294967168 }
 0x2ff   :  { %423 = vsyncpa [#allocation3], 1 }
 0x300   :  { %424 = vsyncpa [#allocation6], 1 }
 0x301   :  { %425 = vsyncpa [#allocation9], 1 }
 0x302   :  { %426 = vsyncpa [#allocation4], 1 }

</bundles_post_ra>
